<compile_context>
chip_gen: v7x
topology: tpu7x:2x2x1
jax: 0.10.0
libtpu: 0.0.40
codegen_flags: <defaults>
</compile_context>

<pallas_src>
import math
from functools import partial

import jax
import jax.numpy as jnp
from jax import lax
from jax.experimental import pallas as pl
from jax.experimental.pallas import tpu as pltpu


def _mha_kernel(q_ref, k_ref, v_ref,
                wq_ref, bq_ref, wk_ref, bk_ref, wv_ref, bv_ref,
                wo_ref, bo_ref,
                o_ref,
                kp_scratch, vp_scratch,
                *, heads: int, d_k: int, scale: float):
    qi = pl.program_id(1)

    # --- K / V projections: once per batch, cached across Q blocks in VMEM scratch.
    @pl.when(qi == 0)
    def _():
        k_bf = k_ref[0].astype(jnp.bfloat16)
        v_bf = v_ref[0].astype(jnp.bfloat16)
        kp = jnp.dot(k_bf, wk_ref[...], preferred_element_type=jnp.float32) + bk_ref[...]
        vp = jnp.dot(v_bf, wv_ref[...], preferred_element_type=jnp.float32) + bv_ref[...]
        kp_scratch[...] = kp.astype(jnp.bfloat16)
        vp_scratch[...] = vp.astype(jnp.bfloat16)

    # --- Q projection for this Q block; fold 1/sqrt(d_k) into Q once.
    q_bf = q_ref[0].astype(jnp.bfloat16)                                   # (tq, D)
    qp = jnp.dot(q_bf, wq_ref[...], preferred_element_type=jnp.float32) + bq_ref[...]
    qp = (qp * scale).astype(jnp.bfloat16)                                 # (tq, D)

    kp = kp_scratch[...]                                                   # (S, D) bf16
    vp = vp_scratch[...]                                                   # (S, D) bf16
    wo = wo_ref[...]                                                       # (D, D) bf16

    tq = qp.shape[0]
    d_model = wo.shape[1]
    out_acc = jnp.zeros((tq, d_model), jnp.float32)

    # --- Per-head attention, concat fused into the output projection.
    # TODO(synk): head slices are lane-narrow when d_k < 128; a lane-aligned (H, S, d_k)
    # re-layout would further improve MXU utilization for large d_model.
    for h in range(heads):
        lo = h * d_k
        qh = qp[:, lo:lo + d_k]                                            # (tq, d_k) bf16
        kh = kp[:, lo:lo + d_k]                                            # (S,  d_k) bf16
        vh = vp[:, lo:lo + d_k]                                            # (S,  d_k) bf16

        # scores = qh @ kh^T without materializing a transpose.
        scores = lax.dot_general(qh, kh, (((1,), (1,)), ((), ())),
                                 preferred_element_type=jnp.float32)       # (tq, S)

        # TODO(synk): optional `mask` path (additive -1e9 before the row max) not wired;
        # the module is exercised with mask=None here.
        m = jnp.max(scores, axis=-1, keepdims=True)
        e = jnp.exp(scores - m)
        denom = jnp.sum(e, axis=-1, keepdims=True)
        p = (e * pl.reciprocal(denom, approx=True)).astype(jnp.bfloat16)   # (tq, S)

        # TODO(synk): nn.Dropout(0.1) is identity in eval mode; training dropout would
        # need pltpu.prng_seed / prng_random_bits here.
        head_out = jnp.dot(p, vh, preferred_element_type=jnp.float32)      # (tq, d_k)

        # concat + out-proj fused: accumulate head_out @ W_out[rows for this head].
        out_acc = out_acc + jnp.dot(head_out.astype(jnp.bfloat16),
                                    wo[lo:lo + d_k, :],
                                    preferred_element_type=jnp.float32)

    o_ref[0] = (out_acc + bo_ref[...]).astype(o_ref.dtype)


def multi_head_attention(q, k, v, params, *, heads: int):
    """q, k, v: [B, S, D] float32. params: pre-transposed ([in, out]) weights + (1, D) biases."""
    B, S, D = q.shape
    assert D % heads == 0, "d_model must be divisible by heads"
    d_k = D // heads
    scale = 1.0 / math.sqrt(d_k)

    # Q-block tile: full S for small sequences, 128 when it divides S evenly.
    tq = 128 if (S > 128 and S % 128 == 0) else S
    num_q = S // tq

    kernel = partial(_mha_kernel, heads=heads, d_k=d_k, scale=scale)

    # Weights stored bf16 in HBM (halves weight DMA + VMEM), biases stay f32.
    wq = params["wq"].astype(jnp.bfloat16)
    wk = params["wk"].astype(jnp.bfloat16)
    wv = params["wv"].astype(jnp.bfloat16)
    wo = params["wo"].astype(jnp.bfloat16)
    bq, bk, bv, bo = params["bq"], params["bk"], params["bv"], params["bo"]

    q_spec = pl.BlockSpec((1, tq, D), lambda b, i: (b, i, 0))
    kv_spec = pl.BlockSpec((1, S, D), lambda b, i: (b, 0, 0))   # constant over Q blocks
    w_spec = pl.BlockSpec((D, D), lambda b, i: (0, 0))          # constant → stays resident
    b_spec = pl.BlockSpec((1, D), lambda b, i: (0, 0))
    o_spec = pl.BlockSpec((1, tq, D), lambda b, i: (b, i, 0))

    # Resident-set estimate for the scoped VMEM limit (clamped to v7x's 64 MiB per TC).
    f32b, bf16b = 4, 2
    vmem_est = (
        4 * D * D * bf16b                  # projection weights (single-buffered, resident)
        + 4 * D * f32b                     # biases
        + 2 * 2 * tq * D * f32b            # double-buffered q block + output block
        + 2 * 2 * S * D * f32b             # double-buffered k, v blocks
        + 2 * S * D * bf16b                # kp / vp scratch
        + 6 * tq * max(S, D) * f32b        # in-kernel temporaries (scores / exp / acc)
    )
    vmem_limit = int(min(max(vmem_est + (4 << 20), 16 << 20), 64 << 20))

    return pl.pallas_call(
        kernel,
        out_shape=jax.ShapeDtypeStruct((B, S, D), q.dtype),
        grid_spec=pltpu.PrefetchScalarGridSpec(
            num_scalar_prefetch=0,
            grid=(B, num_q),
            in_specs=[q_spec, kv_spec, kv_spec,
                      w_spec, b_spec, w_spec, b_spec, w_spec, b_spec,
                      w_spec, b_spec],
            out_specs=o_spec,
            scratch_shapes=[pltpu.VMEM((S, D), jnp.bfloat16),
                            pltpu.VMEM((S, D), jnp.bfloat16)],
        ),
        compiler_params=pltpu.CompilerParams(
            dimension_semantics=("parallel", "arbitrary"),
            vmem_limit_bytes=vmem_limit,
        ),
    )(q, k, v, wq, bq, wk, bk, wv, bv, wo, bo)


def _reference(q, k, v, params, *, heads: int):
    """Pure-JAX f32 reference matching the PyTorch forward (eval mode, mask=None)."""
    B, S, D = q.shape
    d_k = D // heads

    def lin(x, w, b):
        return x @ w + b

    qp = lin(q, params["wq"], params["bq"]).reshape(B, S, heads, d_k).transpose(0, 2, 1, 3)
    kp = lin(k, params["wk"], params["bk"]).reshape(B, S, heads, d_k).transpose(0, 2, 1, 3)
    vp = lin(v, params["wv"], params["bv"]).reshape(B, S, heads, d_k).transpose(0, 2, 1, 3)

    scores = jnp.einsum("bhqd,bhkd->bhqk", qp, kp) / math.sqrt(d_k)
    p = jax.nn.softmax(scores, axis=-1)
    att = jnp.einsum("bhqk,bhkd->bhqd", p, vp)
    concat = att.transpose(0, 2, 1, 3).reshape(B, S, D)
    return lin(concat, params["wo"], params["bo"])


if __name__ == "__main__":
    B, S, D, H = 2, 8, 32, 4

    key = jax.random.PRNGKey(0)
    ks = jax.random.split(key, 12)

    def init_linear(kw, kb, fan_in):
        bound = 1.0 / math.sqrt(fan_in)
        # weight stored pre-transposed as [in, out]
        w = jax.random.uniform(kw, (fan_in, D), jnp.float32, -bound, bound)
        b = jax.random.uniform(kb, (1, D), jnp.float32, -bound, bound)
        return w, b

    wq, bq = init_linear(ks[0], ks[1], D)
    wk, bk = init_linear(ks[2], ks[3], D)
    wv, bv = init_linear(ks[4], ks[5], D)
    wo, bo = init_linear(ks[6], ks[7], D)
    params = dict(wq=wq, bq=bq, wk=wk, bk=bk, wv=wv, bv=bv, wo=wo, bo=bo)

    q = jax.random.normal(ks[8], (B, S, D), jnp.float32)
    k = jax.random.normal(ks[9], (B, S, D), jnp.float32)
    v = jax.random.normal(ks[10], (B, S, D), jnp.float32)

    out = multi_head_attention(q, k, v, params, heads=H)
    out = jax.block_until_ready(out)

    ref = _reference(q, k, v, params, heads=H)
    assert out.shape == (B, S, D)
    # Tolerance loosened vs the f32 version: MXU operands are bf16 (f32 accumulation).
    assert jnp.allclose(out, ref, atol=5e-2, rtol=5e-2), "mismatch vs JAX reference"

    print("KERNEL_OK")
</pallas_src>

<mosaic_0001>
module attributes {stable_mosaic.version = 11 : i64} {
  func.func @_mha_kernel(%arg0: i32, %arg1: i32, %arg2: memref<1x8x32xf32, #tpu.memory_space<vmem>>, %arg3: memref<1x8x32xf32, #tpu.memory_space<vmem>>, %arg4: memref<1x8x32xf32, #tpu.memory_space<vmem>>, %arg5: memref<32x32xbf16, #tpu.memory_space<vmem>>, %arg6: memref<1x32xf32, #tpu.memory_space<vmem>>, %arg7: memref<32x32xbf16, #tpu.memory_space<vmem>>, %arg8: memref<1x32xf32, #tpu.memory_space<vmem>>, %arg9: memref<32x32xbf16, #tpu.memory_space<vmem>>, %arg10: memref<1x32xf32, #tpu.memory_space<vmem>>, %arg11: memref<32x32xbf16, #tpu.memory_space<vmem>>, %arg12: memref<1x32xf32, #tpu.memory_space<vmem>>, %arg13: memref<1x8x32xf32, #tpu.memory_space<vmem>>, %arg14: memref<8x32xbf16, #tpu.memory_space<vmem>>, %arg15: memref<8x32xbf16, #tpu.memory_space<vmem>>) attributes {dimension_semantics = [#tpu.dimension_semantics<parallel>, #tpu.dimension_semantics<arbitrary>], iteration_bounds = array<i64: 2, 1>, scalar_prefetch = 0 : i64, scratch_operands = 2 : i64, tpu.core_type = #tpu.core_type<tc>, window_params = [{transform_indices = @transform_0, window_bounds = array<i64: 1, 8, 32>}, {transform_indices = @transform_1, window_bounds = array<i64: 1, 8, 32>}, {transform_indices = @transform_2, window_bounds = array<i64: 1, 8, 32>}, {pipeline_mode = #tpu.pipeline_mode<synchronous>, transform_indices = @transform_3, window_bounds = array<i64: 32, 32>}, {pipeline_mode = #tpu.pipeline_mode<synchronous>, transform_indices = @transform_4, window_bounds = array<i64: 1, 32>}, {pipeline_mode = #tpu.pipeline_mode<synchronous>, transform_indices = @transform_5, window_bounds = array<i64: 32, 32>}, {pipeline_mode = #tpu.pipeline_mode<synchronous>, transform_indices = @transform_6, window_bounds = array<i64: 1, 32>}, {pipeline_mode = #tpu.pipeline_mode<synchronous>, transform_indices = @transform_7, window_bounds = array<i64: 32, 32>}, {pipeline_mode = #tpu.pipeline_mode<synchronous>, transform_indices = @transform_8, window_bounds = array<i64: 1, 32>}, {pipeline_mode = #tpu.pipeline_mode<synchronous>, transform_indices = @transform_9, window_bounds = array<i64: 32, 32>}, {pipeline_mode = #tpu.pipeline_mode<synchronous>, transform_indices = @transform_10, window_bounds = array<i64: 1, 32>}, {transform_indices = @transform_11, window_bounds = array<i64: 1, 8, 32>}]} {
    %c0_i32 = arith.constant 0 : i32
    %0 = arith.cmpi eq, %arg1, %c0_i32 : i32
    %1 = arith.extui %0 : i1 to i32
    %c0_i32_0 = arith.constant 0 : i32
    %2 = arith.cmpi ne, %1, %c0_i32_0 : i32
    scf.if %2 {
      %c0_40 = arith.constant 0 : index
      %c0_41 = arith.constant 0 : index
      %c0_42 = arith.constant 0 : index
      %104 = vector.load %arg3[%c0_40, %c0_41, %c0_42] : memref<1x8x32xf32, #tpu.memory_space<vmem>>, vector<1x8x32xf32>
      %105 = vector.shape_cast %104 : vector<1x8x32xf32> to vector<8x32xf32>
      %106 = arith.truncf %105 : vector<8x32xf32> to vector<8x32xbf16>
      %c0_43 = arith.constant 0 : index
      %c0_44 = arith.constant 0 : index
      %c0_45 = arith.constant 0 : index
      %107 = vector.load %arg4[%c0_43, %c0_44, %c0_45] : memref<1x8x32xf32, #tpu.memory_space<vmem>>, vector<1x8x32xf32>
      %108 = vector.shape_cast %107 : vector<1x8x32xf32> to vector<8x32xf32>
      %109 = arith.truncf %108 : vector<8x32xf32> to vector<8x32xbf16>
      %c0_46 = arith.constant 0 : index
      %c0_47 = arith.constant 0 : index
      %110 = vector.load %arg7[%c0_46, %c0_47] : memref<32x32xbf16, #tpu.memory_space<vmem>>, vector<32x32xbf16>
      %cst_48 = arith.constant dense<0.000000e+00> : vector<8x32xf32>
      %111 = tpu.matmul %106, %110, %cst_48 {dimension_numbers = #tpu.dot_dimension_numbers<[1], [0], [0], [1], [0, 0, 1, 1], [], []>} : vector<8x32xbf16>, vector<32x32xbf16>, vector<8x32xf32> -> vector<8x32xf32>
      %c0_49 = arith.constant 0 : index
      %c0_50 = arith.constant 0 : index
      %112 = vector.load %arg8[%c0_49, %c0_50] : memref<1x32xf32, #tpu.memory_space<vmem>>, vector<1x32xf32>
      %113 = vector.broadcast %112 : vector<1x32xf32> to vector<8x32xf32>
      %114 = arith.addf %111, %113 : vector<8x32xf32>
      %c0_51 = arith.constant 0 : index
      %c0_52 = arith.constant 0 : index
      %115 = vector.load %arg9[%c0_51, %c0_52] : memref<32x32xbf16, #tpu.memory_space<vmem>>, vector<32x32xbf16>
      %cst_53 = arith.constant dense<0.000000e+00> : vector<8x32xf32>
      %116 = tpu.matmul %109, %115, %cst_53 {dimension_numbers = #tpu.dot_dimension_numbers<[1], [0], [0], [1], [0, 0, 1, 1], [], []>} : vector<8x32xbf16>, vector<32x32xbf16>, vector<8x32xf32> -> vector<8x32xf32>
      %c0_54 = arith.constant 0 : index
      %c0_55 = arith.constant 0 : index
      %117 = vector.load %arg10[%c0_54, %c0_55] : memref<1x32xf32, #tpu.memory_space<vmem>>, vector<1x32xf32>
      %118 = vector.broadcast %117 : vector<1x32xf32> to vector<8x32xf32>
      %119 = arith.addf %116, %118 : vector<8x32xf32>
      %120 = arith.truncf %114 : vector<8x32xf32> to vector<8x32xbf16>
      %c0_56 = arith.constant 0 : index
      %c0_57 = arith.constant 0 : index
      %121 = vector.load %arg14[%c0_56, %c0_57] : memref<8x32xbf16, #tpu.memory_space<vmem>>, vector<8x32xbf16>
      tpu.vector_store %arg14[%c0_56, %c0_57], %120 {strides = array<i32>} : memref<8x32xbf16, #tpu.memory_space<vmem>>, vector<8x32xbf16>,
      %122 = arith.truncf %119 : vector<8x32xf32> to vector<8x32xbf16>
      %c0_58 = arith.constant 0 : index
      %c0_59 = arith.constant 0 : index
      %123 = vector.load %arg15[%c0_58, %c0_59] : memref<8x32xbf16, #tpu.memory_space<vmem>>, vector<8x32xbf16>
      tpu.vector_store %arg15[%c0_58, %c0_59], %122 {strides = array<i32>} : memref<8x32xbf16, #tpu.memory_space<vmem>>, vector<8x32xbf16>,
    } else {
    }
    %c0 = arith.constant 0 : index
    %c0_1 = arith.constant 0 : index
    %c0_2 = arith.constant 0 : index
    %3 = vector.load %arg2[%c0, %c0_1, %c0_2] : memref<1x8x32xf32, #tpu.memory_space<vmem>>, vector<1x8x32xf32>
    %4 = vector.shape_cast %3 : vector<1x8x32xf32> to vector<8x32xf32>
    %5 = arith.truncf %4 : vector<8x32xf32> to vector<8x32xbf16>
    %c0_3 = arith.constant 0 : index
    %c0_4 = arith.constant 0 : index
    %6 = vector.load %arg5[%c0_3, %c0_4] : memref<32x32xbf16, #tpu.memory_space<vmem>>, vector<32x32xbf16>
    %cst = arith.constant dense<0.000000e+00> : vector<8x32xf32>
    %7 = tpu.matmul %5, %6, %cst {dimension_numbers = #tpu.dot_dimension_numbers<[1], [0], [0], [1], [0, 0, 1, 1], [], []>} : vector<8x32xbf16>, vector<32x32xbf16>, vector<8x32xf32> -> vector<8x32xf32>
    %c0_5 = arith.constant 0 : index
    %c0_6 = arith.constant 0 : index
    %8 = vector.load %arg6[%c0_5, %c0_6] : memref<1x32xf32, #tpu.memory_space<vmem>>, vector<1x32xf32>
    %9 = vector.broadcast %8 : vector<1x32xf32> to vector<8x32xf32>
    %10 = arith.addf %7, %9 : vector<8x32xf32>
    %cst_7 = arith.constant 0.353553385 : f32
    %11 = vector.broadcast %cst_7 : f32 to vector<8x32xf32>
    %12 = arith.mulf %10, %11 : vector<8x32xf32>
    %13 = arith.truncf %12 : vector<8x32xf32> to vector<8x32xbf16>
    %c0_8 = arith.constant 0 : index
    %c0_9 = arith.constant 0 : index
    %14 = vector.load %arg14[%c0_8, %c0_9] : memref<8x32xbf16, #tpu.memory_space<vmem>>, vector<8x32xbf16>
    %c0_10 = arith.constant 0 : index
    %c0_11 = arith.constant 0 : index
    %15 = vector.load %arg15[%c0_10, %c0_11] : memref<8x32xbf16, #tpu.memory_space<vmem>>, vector<8x32xbf16>
    %c0_12 = arith.constant 0 : index
    %c0_13 = arith.constant 0 : index
    %16 = vector.load %arg11[%c0_12, %c0_13] : memref<32x32xbf16, #tpu.memory_space<vmem>>, vector<32x32xbf16>
    %cst_14 = arith.constant 0.000000e+00 : f32
    %17 = vector.broadcast %cst_14 : f32 to vector<8x32xf32>
    %18 = vector.extract_strided_slice %13 {offsets = [0, 0], sizes = [8, 8], strides = [1, 1]} : vector<8x32xbf16> to vector<8x8xbf16>
    %19 = vector.extract_strided_slice %14 {offsets = [0, 0], sizes = [8, 8], strides = [1, 1]} : vector<8x32xbf16> to vector<8x8xbf16>
    %20 = vector.extract_strided_slice %15 {offsets = [0, 0], sizes = [8, 8], strides = [1, 1]} : vector<8x32xbf16> to vector<8x8xbf16>
    %cst_15 = arith.constant dense<0.000000e+00> : vector<8x8xf32>
    %21 = tpu.matmul %18, %19, %cst_15 {dimension_numbers = #tpu.dot_dimension_numbers<[1], [1], [0], [0], [0, 0, 1, 0], [], []>} : vector<8x8xbf16>, vector<8x8xbf16>, vector<8x8xf32> -> vector<8x8xf32>
    %cst_16 = arith.constant dense<0xFF800000> : vector<8xf32>
    %22 = vector.multi_reduction <maximumf>, %21, %cst_16 [1] : vector<8x8xf32> to vector<8xf32>
    %23 = vector.shape_cast %22 : vector<8xf32> to vector<8x1xf32>
    %24 = vector.broadcast %23 : vector<8x1xf32> to vector<8x8xf32>
    %25 = arith.subf %21, %24 : vector<8x8xf32>
    %26 = math.exp %25 : vector<8x8xf32>
    %cst_17 = arith.constant dense<0.000000e+00> : vector<8xf32>
    %27 = vector.multi_reduction <add>, %26, %cst_17 [1] : vector<8x8xf32> to vector<8xf32>
    %28 = vector.shape_cast %27 : vector<8xf32> to vector<8x1xf32>
    %29 = tpu.reciprocal %28 {approx = true} : vector<8x1xf32> -> vector<8x1xf32>
    %30 = vector.broadcast %29 : vector<8x1xf32> to vector<8x8xf32>
    %31 = arith.mulf %26, %30 : vector<8x8xf32>
    %32 = arith.truncf %31 : vector<8x8xf32> to vector<8x8xbf16>
    %cst_18 = arith.constant dense<0.000000e+00> : vector<8x8xf32>
    %33 = tpu.matmul %32, %20, %cst_18 {dimension_numbers = #tpu.dot_dimension_numbers<[1], [0], [0], [1], [0, 0, 1, 1], [], []>} : vector<8x8xbf16>, vector<8x8xbf16>, vector<8x8xf32> -> vector<8x8xf32>
    %34 = arith.truncf %33 : vector<8x8xf32> to vector<8x8xbf16>
    %35 = vector.extract_strided_slice %16 {offsets = [0, 0], sizes = [8, 32], strides = [1, 1]} : vector<32x32xbf16> to vector<8x32xbf16>
    %cst_19 = arith.constant dense<0.000000e+00> : vector<8x32xf32>
    %36 = tpu.matmul %34, %35, %cst_19 {dimension_numbers = #tpu.dot_dimension_numbers<[1], [0], [0], [1], [0, 0, 1, 1], [], []>} : vector<8x8xbf16>, vector<8x32xbf16>, vector<8x32xf32> -> vector<8x32xf32>
    %37 = arith.addf %17, %36 : vector<8x32xf32>
    %38 = vector.extract_strided_slice %13 {offsets = [0, 8], sizes = [8, 8], strides = [1, 1]} : vector<8x32xbf16> to vector<8x8xbf16>
    %39 = vector.extract_strided_slice %14 {offsets = [0, 8], sizes = [8, 8], strides = [1, 1]} : vector<8x32xbf16> to vector<8x8xbf16>
    %40 = vector.extract_strided_slice %15 {offsets = [0, 8], sizes = [8, 8], strides = [1, 1]} : vector<8x32xbf16> to vector<8x8xbf16>
    %cst_20 = arith.constant dense<0.000000e+00> : vector<8x8xf32>
    %41 = tpu.matmul %38, %39, %cst_20 {dimension_numbers = #tpu.dot_dimension_numbers<[1], [1], [0], [0], [0, 0, 1, 0], [], []>} : vector<8x8xbf16>, vector<8x8xbf16>, vector<8x8xf32> -> vector<8x8xf32>
    %cst_21 = arith.constant dense<0xFF800000> : vector<8xf32>
    %42 = vector.multi_reduction <maximumf>, %41, %cst_21 [1] : vector<8x8xf32> to vector<8xf32>
    %43 = vector.shape_cast %42 : vector<8xf32> to vector<8x1xf32>
    %44 = vector.broadcast %43 : vector<8x1xf32> to vector<8x8xf32>
    %45 = arith.subf %41, %44 : vector<8x8xf32>
    %46 = math.exp %45 : vector<8x8xf32>
    %cst_22 = arith.constant dense<0.000000e+00> : vector<8xf32>
    %47 = vector.multi_reduction <add>, %46, %cst_22 [1] : vector<8x8xf32> to vector<8xf32>
    %48 = vector.shape_cast %47 : vector<8xf32> to vector<8x1xf32>
    %49 = tpu.reciprocal %48 {approx = true} : vector<8x1xf32> -> vector<8x1xf32>
    %50 = vector.broadcast %49 : vector<8x1xf32> to vector<8x8xf32>
    %51 = arith.mulf %46, %50 : vector<8x8xf32>
    %52 = arith.truncf %51 : vector<8x8xf32> to vector<8x8xbf16>
    %cst_23 = arith.constant dense<0.000000e+00> : vector<8x8xf32>
    %53 = tpu.matmul %52, %40, %cst_23 {dimension_numbers = #tpu.dot_dimension_numbers<[1], [0], [0], [1], [0, 0, 1, 1], [], []>} : vector<8x8xbf16>, vector<8x8xbf16>, vector<8x8xf32> -> vector<8x8xf32>
    %54 = arith.truncf %53 : vector<8x8xf32> to vector<8x8xbf16>
    %55 = vector.extract_strided_slice %16 {offsets = [8, 0], sizes = [8, 32], strides = [1, 1]} : vector<32x32xbf16> to vector<8x32xbf16>
    %cst_24 = arith.constant dense<0.000000e+00> : vector<8x32xf32>
    %56 = tpu.matmul %54, %55, %cst_24 {dimension_numbers = #tpu.dot_dimension_numbers<[1], [0], [0], [1], [0, 0, 1, 1], [], []>} : vector<8x8xbf16>, vector<8x32xbf16>, vector<8x32xf32> -> vector<8x32xf32>
    %57 = arith.addf %37, %56 : vector<8x32xf32>
    %58 = vector.extract_strided_slice %13 {offsets = [0, 16], sizes = [8, 8], strides = [1, 1]} : vector<8x32xbf16> to vector<8x8xbf16>
    %59 = vector.extract_strided_slice %14 {offsets = [0, 16], sizes = [8, 8], strides = [1, 1]} : vector<8x32xbf16> to vector<8x8xbf16>
    %60 = vector.extract_strided_slice %15 {offsets = [0, 16], sizes = [8, 8], strides = [1, 1]} : vector<8x32xbf16> to vector<8x8xbf16>
    %cst_25 = arith.constant dense<0.000000e+00> : vector<8x8xf32>
    %61 = tpu.matmul %58, %59, %cst_25 {dimension_numbers = #tpu.dot_dimension_numbers<[1], [1], [0], [0], [0, 0, 1, 0], [], []>} : vector<8x8xbf16>, vector<8x8xbf16>, vector<8x8xf32> -> vector<8x8xf32>
    %cst_26 = arith.constant dense<0xFF800000> : vector<8xf32>
    %62 = vector.multi_reduction <maximumf>, %61, %cst_26 [1] : vector<8x8xf32> to vector<8xf32>
    %63 = vector.shape_cast %62 : vector<8xf32> to vector<8x1xf32>
    %64 = vector.broadcast %63 : vector<8x1xf32> to vector<8x8xf32>
    %65 = arith.subf %61, %64 : vector<8x8xf32>
    %66 = math.exp %65 : vector<8x8xf32>
    %cst_27 = arith.constant dense<0.000000e+00> : vector<8xf32>
    %67 = vector.multi_reduction <add>, %66, %cst_27 [1] : vector<8x8xf32> to vector<8xf32>
    %68 = vector.shape_cast %67 : vector<8xf32> to vector<8x1xf32>
    %69 = tpu.reciprocal %68 {approx = true} : vector<8x1xf32> -> vector<8x1xf32>
    %70 = vector.broadcast %69 : vector<8x1xf32> to vector<8x8xf32>
    %71 = arith.mulf %66, %70 : vector<8x8xf32>
    %72 = arith.truncf %71 : vector<8x8xf32> to vector<8x8xbf16>
    %cst_28 = arith.constant dense<0.000000e+00> : vector<8x8xf32>
    %73 = tpu.matmul %72, %60, %cst_28 {dimension_numbers = #tpu.dot_dimension_numbers<[1], [0], [0], [1], [0, 0, 1, 1], [], []>} : vector<8x8xbf16>, vector<8x8xbf16>, vector<8x8xf32> -> vector<8x8xf32>
    %74 = arith.truncf %73 : vector<8x8xf32> to vector<8x8xbf16>
    %75 = vector.extract_strided_slice %16 {offsets = [16, 0], sizes = [8, 32], strides = [1, 1]} : vector<32x32xbf16> to vector<8x32xbf16>
    %cst_29 = arith.constant dense<0.000000e+00> : vector<8x32xf32>
    %76 = tpu.matmul %74, %75, %cst_29 {dimension_numbers = #tpu.dot_dimension_numbers<[1], [0], [0], [1], [0, 0, 1, 1], [], []>} : vector<8x8xbf16>, vector<8x32xbf16>, vector<8x32xf32> -> vector<8x32xf32>
    %77 = arith.addf %57, %76 : vector<8x32xf32>
    %78 = vector.extract_strided_slice %13 {offsets = [0, 24], sizes = [8, 8], strides = [1, 1]} : vector<8x32xbf16> to vector<8x8xbf16>
    %79 = vector.extract_strided_slice %14 {offsets = [0, 24], sizes = [8, 8], strides = [1, 1]} : vector<8x32xbf16> to vector<8x8xbf16>
    %80 = vector.extract_strided_slice %15 {offsets = [0, 24], sizes = [8, 8], strides = [1, 1]} : vector<8x32xbf16> to vector<8x8xbf16>
    %cst_30 = arith.constant dense<0.000000e+00> : vector<8x8xf32>
    %81 = tpu.matmul %78, %79, %cst_30 {dimension_numbers = #tpu.dot_dimension_numbers<[1], [1], [0], [0], [0, 0, 1, 0], [], []>} : vector<8x8xbf16>, vector<8x8xbf16>, vector<8x8xf32> -> vector<8x8xf32>
    %cst_31 = arith.constant dense<0xFF800000> : vector<8xf32>
    %82 = vector.multi_reduction <maximumf>, %81, %cst_31 [1] : vector<8x8xf32> to vector<8xf32>
    %83 = vector.shape_cast %82 : vector<8xf32> to vector<8x1xf32>
    %84 = vector.broadcast %83 : vector<8x1xf32> to vector<8x8xf32>
    %85 = arith.subf %81, %84 : vector<8x8xf32>
    %86 = math.exp %85 : vector<8x8xf32>
    %cst_32 = arith.constant dense<0.000000e+00> : vector<8xf32>
    %87 = vector.multi_reduction <add>, %86, %cst_32 [1] : vector<8x8xf32> to vector<8xf32>
    %88 = vector.shape_cast %87 : vector<8xf32> to vector<8x1xf32>
    %89 = tpu.reciprocal %88 {approx = true} : vector<8x1xf32> -> vector<8x1xf32>
    %90 = vector.broadcast %89 : vector<8x1xf32> to vector<8x8xf32>
    %91 = arith.mulf %86, %90 : vector<8x8xf32>
    %92 = arith.truncf %91 : vector<8x8xf32> to vector<8x8xbf16>
    %cst_33 = arith.constant dense<0.000000e+00> : vector<8x8xf32>
    %93 = tpu.matmul %92, %80, %cst_33 {dimension_numbers = #tpu.dot_dimension_numbers<[1], [0], [0], [1], [0, 0, 1, 1], [], []>} : vector<8x8xbf16>, vector<8x8xbf16>, vector<8x8xf32> -> vector<8x8xf32>
    %94 = arith.truncf %93 : vector<8x8xf32> to vector<8x8xbf16>
    %95 = vector.extract_strided_slice %16 {offsets = [24, 0], sizes = [8, 32], strides = [1, 1]} : vector<32x32xbf16> to vector<8x32xbf16>
    %cst_34 = arith.constant dense<0.000000e+00> : vector<8x32xf32>
    %96 = tpu.matmul %94, %95, %cst_34 {dimension_numbers = #tpu.dot_dimension_numbers<[1], [0], [0], [1], [0, 0, 1, 1], [], []>} : vector<8x8xbf16>, vector<8x32xbf16>, vector<8x32xf32> -> vector<8x32xf32>
    %97 = arith.addf %77, %96 : vector<8x32xf32>
    %c0_35 = arith.constant 0 : index
    %c0_36 = arith.constant 0 : index
    %98 = vector.load %arg12[%c0_35, %c0_36] : memref<1x32xf32, #tpu.memory_space<vmem>>, vector<1x32xf32>
    %99 = vector.broadcast %98 : vector<1x32xf32> to vector<8x32xf32>
    %100 = arith.addf %97, %99 : vector<8x32xf32>
    %c0_37 = arith.constant 0 : index
    %c0_38 = arith.constant 0 : index
    %c0_39 = arith.constant 0 : index
    %101 = vector.load %arg13[%c0_37, %c0_38, %c0_39] : memref<1x8x32xf32, #tpu.memory_space<vmem>>, vector<1x8x32xf32>
    %102 = vector.shape_cast %101 : vector<1x8x32xf32> to vector<8x32xf32>
    %103 = vector.shape_cast %100 : vector<8x32xf32> to vector<1x8x32xf32>
    tpu.vector_store %arg13[%c0_37, %c0_38, %c0_39], %103 {strides = array<i32>} : memref<1x8x32xf32, #tpu.memory_space<vmem>>, vector<1x8x32xf32>,
    return
  }
  func.func @transform_0(%arg0: i32, %arg1: i32) -> (i32, i32, i32) {
    %c0_i32 = arith.constant 0 : i32
    %c0_i32_0 = arith.constant 0 : i32
    return %arg0, %arg1, %c0_i32 : i32, i32, i32
  }
  func.func @transform_1(%arg0: i32, %arg1: i32) -> (i32, i32, i32) {
    %c0_i32 = arith.constant 0 : i32
    %c0_i32_0 = arith.constant 0 : i32
    %c0_i32_1 = arith.constant 0 : i32
    return %arg0, %c0_i32, %c0_i32_0 : i32, i32, i32
  }
  func.func @transform_2(%arg0: i32, %arg1: i32) -> (i32, i32, i32) {
    %c0_i32 = arith.constant 0 : i32
    %c0_i32_0 = arith.constant 0 : i32
    %c0_i32_1 = arith.constant 0 : i32
    return %arg0, %c0_i32, %c0_i32_0 : i32, i32, i32
  }
  func.func @transform_3(%arg0: i32, %arg1: i32) -> (i32, i32) {
    %c0_i32 = arith.constant 0 : i32
    %c0_i32_0 = arith.constant 0 : i32
    %c0_i32_1 = arith.constant 0 : i32
    return %c0_i32, %c0_i32_0 : i32, i32
  }
  func.func @transform_4(%arg0: i32, %arg1: i32) -> (i32, i32) {
    %c0_i32 = arith.constant 0 : i32
    %c0_i32_0 = arith.constant 0 : i32
    %c0_i32_1 = arith.constant 0 : i32
    return %c0_i32, %c0_i32_0 : i32, i32
  }
  func.func @transform_5(%arg0: i32, %arg1: i32) -> (i32, i32) {
    %c0_i32 = arith.constant 0 : i32
    %c0_i32_0 = arith.constant 0 : i32
    %c0_i32_1 = arith.constant 0 : i32
    return %c0_i32, %c0_i32_0 : i32, i32
  }
  func.func @transform_6(%arg0: i32, %arg1: i32) -> (i32, i32) {
    %c0_i32 = arith.constant 0 : i32
    %c0_i32_0 = arith.constant 0 : i32
    %c0_i32_1 = arith.constant 0 : i32
    return %c0_i32, %c0_i32_0 : i32, i32
  }
  func.func @transform_7(%arg0: i32, %arg1: i32) -> (i32, i32) {
    %c0_i32 = arith.constant 0 : i32
    %c0_i32_0 = arith.constant 0 : i32
    %c0_i32_1 = arith.constant 0 : i32
    return %c0_i32, %c0_i32_0 : i32, i32
  }
  func.func @transform_8(%arg0: i32, %arg1: i32) -> (i32, i32) {
    %c0_i32 = arith.constant 0 : i32
    %c0_i32_0 = arith.constant 0 : i32
    %c0_i32_1 = arith.constant 0 : i32
    return %c0_i32, %c0_i32_0 : i32, i32
  }
  func.func @transform_9(%arg0: i32, %arg1: i32) -> (i32, i32) {
    %c0_i32 = arith.constant 0 : i32
    %c0_i32_0 = arith.constant 0 : i32
    %c0_i32_1 = arith.constant 0 : i32
    return %c0_i32, %c0_i32_0 : i32, i32
  }
  func.func @transform_10(%arg0: i32, %arg1: i32) -> (i32, i32) {
    %c0_i32 = arith.constant 0 : i32
    %c0_i32_0 = arith.constant 0 : i32
    %c0_i32_1 = arith.constant 0 : i32
    return %c0_i32, %c0_i32_0 : i32, i32
  }
  func.func @transform_11(%arg0: i32, %arg1: i32) -> (i32, i32, i32) {
    %c0_i32 = arith.constant 0 : i32
    %c0_i32_0 = arith.constant 0 : i32
    return %arg0, %arg1, %c0_i32 : i32, i32, i32
  }
}

</mosaic_0001>

<bundles_post_ra>
// kernel: tpu_custom_call.1
= control target key start
LH: loop header
LB: loop body
LE: loop exit
PB: predicated region body
PF: predicated region fallthrough
CT: control target
= control target key end

     0   :  { %s2703_s0 = inlined_call_operand.hbm [shape: f32[2,8,32], index: 0, kind: input, shape index: {}]   ;;  %s2704_s1 = inlined_call_operand.hbm [shape: f32[2,8,32], index: 1, kind: input, shape index: {}]   ;;  %s2705_s2 = inlined_call_operand.hbm [shape: f32[2,8,32], index: 2, kind: input, shape index: {}]   ;;  %s2706_s3 = inlined_call_operand.hbm [shape: bf16[32,32], index: 3, kind: input, shape index: {}]   ;;  %s2707_s4 = inlined_call_operand.vmem [shape: f32[1,32], index: 4, kind: input, shape index: {}]   ;;  %s2708_s5 = inlined_call_operand.vmem [shape: bf16[32,32], index: 5, kind: input, shape index: {}]   ;;  %s2709_s6 = inlined_call_operand.vmem [shape: f32[1,32], index: 6, kind: input, shape index: {}]   ;;  %s2710_s7 = inlined_call_operand.hbm [shape: bf16[32,32], index: 7, kind: input, shape index: {}]   ;;  %s2711_s8 = inlined_call_operand.hbm [shape: f32[1,32], index: 8, kind: input, shape index: {}]   ;;  %s2712_s9 = inlined_call_operand.vmem [shape: bf16[32,32], index: 9, kind: input, shape index: {}]   ;;  %s2713_s10 = inlined_call_operand.vmem [shape: f32[1,32], index: 10, kind: input, shape index: {}]   ;;  %s2714_s11 = inlined_call_operand.hbm [shape: f32[2,8,32], index: 11, kind: output, shape index: {}]  }
   0x1   :  { %2740 = sst [smem:[#allocation29_spill]] %s2704_s1 }
   0x2   :  { %2741 = sst [smem:[#allocation30_spill]] %s2706_s3 }
   0x3   :  { %2742 = sst [smem:[#allocation31_spill]] %s2707_s4 }
   0x4   :  { %2743 = sst [smem:[#allocation32_spill]] %s2709_s6 }
   0x5   :  { %2744 = sst [smem:[#allocation33_spill]] %s2712_s9 }
   0x6   :  { %2745 = sst [smem:[#allocation34_spill]] %s2713_s10 }
   0x7   :  { %2746 = sst [smem:[#allocation35_spill]] %s2714_s11 }
   0x8   :  { %16 = vsyncpa [#allocation5], 0 }
   0x9   :  { %18 = vsyncpa [#allocation5 + $0x1], 0 }
   0xa   :  { %19 = vsyncpa [#allocation8], 0 }
   0xb   :  { %21 = vsyncpa [#allocation8 + $0x1], 0 }
   0xc   :  { %22 = vsyncpa [#allocation11], 0 }
   0xd   :  { %23 = vsyncpa [#allocation14], 0 }
   0xe   :  { %24 = vsyncpa [#allocation6], 0 }
   0xf   :  { %26 = vsyncpa [#allocation6 + $0x1], 0  ;;  %s2224_s17 = smov 0   ;;  %s2226_s18 = smov 0  }
  0x10   :  { %s2228_s19 = smov 0   ;;  %s2230_s20 = smov 0  }
  0x11   :  { %s2232_s21 = smov 0   ;;  %s2234_s22 = smov 0  }
  0x12 LB: > { %2747 = sst [smem:[#allocation21_spill]] %s2128_s17  ;;  %s2255_s23 = sadd.s32 4294967295, %s2148_s22   ;;  %s2148_s22 = sphi %s2234_s22, %s32_s22   ;;  %s2144_s21 = sphi %s2232_s21, %s2795_s21   ;;  %s2140_s20 = sphi %s2230_s20, %s2794_s20   ;;  %s2136_s19 = sphi %s2228_s19, %s2798_s19   ;;  %s2132_s18 = sphi %s2226_s18, %s2797_s18   ;;  %s2128_s17 = sphi %s2224_s17, %s2796_s17  }
  0x13   : > { %2748 = sst [smem:[#allocation22_spill]] %s2140_s20  ;;  %s1566_s24 = sadd.s32 4294967294, %s2148_s22  }
  0x14   : > { %2749 = sst [smem:[#allocation23_spill]] %s2144_s21  ;;  %p66_p0 = scmp.ne.s32.totalorder %s2132_s18, %s2128_s17 }
  0x15   : > { %2750 = sst [smem:[#allocation24_spill]] %s2148_s22  ;;  %p2717_p1 = scmp.eq.s32.totalorder %s2255_s23, 0 }
  0x16   : > { %p318_p3 = scmp.eq.s32.totalorder %s1566_s24, 1  ;;  %p1567_p5 = scmp.ge.s32.totalorder %s2148_s22, 1 }
  0x17   : > { %p2264_p4 = por %p2717_p1, %p66_p0  ;;  %p325_p7 = scmp.lt.s32.totalorder %s2148_s22, 3 }
  0x18   : > { %p2269_p6 = por %p318_p3, %p66_p0  ;;  %s2150_s28 = smov [#allocation10]  }
  0x19   : > { %s2751_s25 = scalar_select %p2264_p4, 1, 0 }
  0x1a   : > { %s2752_s26 = scalar_select %p2269_p6, 1, 0 }
  0x1b   : > { %p2274_p8 = pnand %p1567_p5, %p325_p7  ;;  %s337_s29 = sshll.u32 %s2150_s28, 4  ;;  %s338_s29 = int_to_ptr.vmem [resolvable:$true] %s337_s29 }
  0x1c   : > { %2753 = sst [smem:[#allocation25_spill]] %s2752_s26  ;;  %s44_s12 = sadd.s32 1, %s2144_s21 }
  0x1d   : > { %s2754_s27 = scalar_select %p2274_p8, 1, 0 }
  0x1e   : > { %p1766_p9 = pneg %p2274_p8  ;;  %s2756_s3 = sld [smem:[#allocation30_spill]] }
  0x20   : > { %p2283_p11 = pnand %p1766_p9, %p2717_p1 }
  0x22   : > { %s2755_s30 = scalar_select %p2283_p11, 1, 0 }
  0x23   : > { %p2296_p13 = pneg %p2283_p11 }
  0x24   : > { %s1880_s15 = scalar_lea.hbm %s2756_s3, 256 }
  0x25   : > { %p1881_p12 = scmp.ne.s32.totalorder %s2756_s3, %s1880_s15  ;;  %p1887_p5 = scmp.lt.u32.totalorder %s1880_s15, %s2756_s3 }
  0x26   : > { %s2757_s28 = scalar_select %p2296_p13, 1, 0 }
  0x27   : > { %p1883_p0 = pnand %p2296_p13, %p1881_p12 }
  0x29   : > { %p1884_p3 = pneg %p1883_p0 }
  0x2b   : > { %p1889_p7 = pnand %p1887_p5, %p1884_p3 }
  0x2d   : > { %1892 = shalt.err (!%p1889_p7)
}
  0x2e   : > { %s1893_s13 = scalar_lea.vmem %s338_s29, 256  ;;  %p1901_p2 = scmp.lt.s32.totalorder %s338_s29, %s338_s29 }
  0x2f   : > { %p1894_p9 = scmp.ne.s32.totalorder %s338_s29, %s1893_s13  ;;  %p1902_p6 = scmp.lt.s32.totalorder %s1893_s13, %s1893_s13 }
  0x31   : > { %p1896_p10 = pnand %p1894_p9, %p2296_p13  ;;  %p1903_p4 = por %p1902_p6, %p1901_p2 }
  0x33   : > { %p1897_p1 = pneg %p1896_p10 }
  0x35   : > { %p1904_p8 = pnand %p1903_p4, %p1897_p1 }
  0x37   : > { %1907 = shalt.err (!%p1904_p8)
}
  0x38   : > { %s2721_s14 = smov 64   ;;  %s2722_s17 = smov 4  }
  0x39   : > { %1769 = dma.hbm_to_vmem [thread:$0]  (!%p2283_p11), %s2756_s3, 256, %s338_s29, [#allocation11], %s2721_s14, %s2721_s14, %s2722_s17  }
  0x3a   : > { %p46_p1 = scmp.ge.s32.totalorder %s44_s12, 2  ;;  %s53_s16 = sadd.s32 1, %s2136_s19 }
  0x3b   : > { %p60_p2 = scmp.ne.s32.totalorder %s2136_s19, %s2132_s18  ;;  %p61_p4 = scmp.eq.s32.totalorder %s2148_s22, 0 }
  0x3c   : > { %s2800_s12 = smov (%p46_p1, %s44_s12), 0  ;;  %p2759_p8 = scmp.eq.s32.totalorder %s2255_s23, 1 }
  0x3d   : > { %2758 = sst [smem:[#allocation26_spill]] %s2800_s12  ;;  %p62_p6 = por %p61_p4, %p60_p2 }
  0x3e   : > { %p2323_p10 = por %p2759_p8, %p60_p2  ;;  %s48_s13 = ssub.s32 %s2144_s21, %s2800_s12 }
  0x3f   : > { %p1793_p12 = scmp.lt.s32.totalorder %s2148_s22, 2  ;;  %p51_p0 = scmp.eq.s32.totalorder %s48_s13, 0 }
  0x40   : > { %s2760_s24 = scalar_select %p2323_p10, 1, 0 }
  0x41   : > { %s2724_s11 = sand.u32 1, %s2136_s19   ;;  %s2336_s26 = sshll.u32 %s2144_s21, 7 }
  0x42   : > { %2761 = sst [smem:[#allocation27_spill]] %s2760_s24  ;;  %s2333_s29 = sshll.u32 %s2724_s11, 3 }
  0x43   : > { %s2339_s15 = scalar_select %p51_p0, %s2136_s19, %s53_s16  }
  0x44   : > { %p2341_p3 = pnand %p1793_p12, %p62_p6  ;;  %s409_s17 = sand.u32 1, %s2148_s22  }
  0x45   : > { %2762 = sst [smem:[#allocation28_spill]] %s2339_s15  ;;  %s2764_s1 = sld [smem:[#allocation29_spill]] }
  0x46   : > { %s2763_s14 = scalar_select %p2341_p3, 1, 0 }
  0x47   : > { %s413_s11 = scalar_lea.vmem [#allocation7], %s2333_s29  ;;  %s2153_s16 = smov [#allocation12]  }
  0x48   : > { %s420_s21 = sshll.u32 %s413_s11, 4  ;;  %s2355_s15 = sshll.u32 %s2153_s16, 4  ;;  %s2353_s21 = int_to_ptr.vmem [resolvable:$true] %s420_s21  ;;  %s360_s15 = int_to_ptr.vmem [resolvable:$true] %s2355_s15 }
  0x49   : > { %s2357_s24 = scalar_lea.sflag [#allocation8], %s409_s17  ;;  %p2363_p7 = pneg %p2341_p3 }
  0x4b   : > { %s2350_s13 = scalar_lea.hbm %s2764_s1, %s2336_s26  ;;  %s1913_s22 = scalar_lea.hbm %s2764_s1, 256 }
  0x4c   : > { %s1908_s10 = scalar_lea.hbm %s2350_s13, 128  ;;  %p1914_p2 = scmp.lt.u32.totalorder %s2350_s13, %s2764_s1 }
  0x4d   : > { %p1909_p5 = scmp.ne.s32.totalorder %s2350_s13, %s1908_s10  ;;  %p1915_p4 = scmp.lt.u32.totalorder %s1913_s22, %s1908_s10 }
  0x4e   : > { %s2765_s3 = scalar_select %p2363_p7, 1, 0 }
  0x4f   : > { %p1911_p9 = pnand %p2363_p7, %p1909_p5  ;;  %p1916_p6 = por %p1915_p4, %p1914_p2 }
  0x50   : > { %p1917_p8 = scmp.lt.u32.totalorder %s1908_s10, %s2350_s13 }
  0x51   : > { %p1912_p1 = pneg %p1911_p9 }
  0x52   : > { %p1918_p12 = por %p1917_p8, %p1916_p6 }
  0x54   : > { %p1919_p0 = pnand %p1918_p12, %p1912_p1 }
  0x56   : > { %1922 = shalt.err (!%p1919_p0)
}
  0x57   : > { %s1923_s17 = scalar_lea.vmem %s2353_s21, 128  ;;  %s2154_s12 = smov [#allocation7]  }
  0x58   : > { %p1924_p5 = scmp.ne.s32.totalorder %s2353_s21, %s1923_s17  ;;  %s1928_s11 = sshll.u32 %s2154_s12, 4  ;;  %s1929_s11 = int_to_ptr.vmem [resolvable:$false] %s1928_s11 }
  0x59   : > { %s1930_s20 = scalar_lea.vmem %s1929_s11, 256  ;;  %p1931_p11 = scmp.lt.s32.totalorder %s2353_s21, %s1929_s11 }
  0x5a   : > { %p1926_p9 = pnand %p1924_p5, %p2363_p7  ;;  %p1932_p13 = scmp.lt.s32.totalorder %s1930_s20, %s1923_s17 }
  0x5c   : > { %p1927_p10 = pneg %p1926_p9  ;;  %p1933_p2 = por %p1932_p13, %p1931_p11 }
  0x5e   : > { %p1934_p4 = pnand %p1933_p2, %p1927_p10 }
  0x60   : > { %1937 = shalt.err (!%p1934_p4)
}
  0x61   : > { %1782 = dma.hbm_to_vmem [thread:$0]  (!%p2341_p3), %s2350_s13, 128, %s2353_s21, %s2357_s24  }
  0x62   : > { %s1938_s16 = scalar_lea.hbm %s2710_s7, 256  ;;  %p2766_p11 = scmp.ne.s32.totalorder %s2757_s28, 0 }
  0x63   : > { %p1939_p1 = scmp.ne.s32.totalorder %s2710_s7, %s1938_s16  ;;  %p1945_p6 = scmp.lt.u32.totalorder %s1938_s16, %s2710_s7 }
  0x65   : > { %p1941_p13 = pnand %p1939_p1, %p2766_p11 }
  0x67   : > { %p1942_p10 = pneg %p1941_p13 }
  0x69   : > { %p1947_p8 = pnand %p1945_p6, %p1942_p10 }
  0x6b   : > { %1950 = shalt.err (!%p1947_p8)
}
  0x6c   : > { %s1951_s20 = scalar_lea.vmem %s360_s15, 256  ;;  %p1959_p9 = scmp.lt.s32.totalorder %s360_s15, %s360_s15 }
  0x6d   : > { %p1952_p12 = scmp.ne.s32.totalorder %s360_s15, %s1951_s20  ;;  %p1960_p2 = scmp.lt.s32.totalorder %s1951_s20, %s1951_s20 }
  0x6f   : > { %p1954_p0 = pnand %p1952_p12, %p2766_p11  ;;  %p1961_p4 = por %p1960_p2, %p1959_p9 }
  0x71   : > { %p1955_p5 = pneg %p1954_p0 }
  0x73   : > { %p1962_p3 = pnand %p1961_p4, %p1955_p5 }
  0x75   : > { %1965 = shalt.err (!%p1962_p3)
}
  0x76   : > { %p2767_p1 = scmp.ne.s32.totalorder %s2755_s30, 0  ;;  %s2768_s1 = smov 4  }
  0x77   : > { %s2769_s21 = smov 64   ;;  %s2155_s22 = smov [#allocation13]  }
  0x78   : > { %1772 = dma.hbm_to_vmem [thread:$0]  (!%p2767_p1), %s2710_s7, 256, %s360_s15, [#allocation11], %s2769_s21, %s2769_s21, %s2768_s1  }
  0x79   : > { %s373_s16 = sshll.u32 %s2155_s22, 4  ;;  %s1966_s11 = scalar_lea.hbm %s2711_s8, 16  ;;  %s374_s16 = int_to_ptr.vmem [resolvable:$true] %s373_s16 }
  0x7a   : > { %p1967_p3 = scmp.ne.s32.totalorder %s2711_s8, %s1966_s11  ;;  %p1973_p6 = scmp.lt.u32.totalorder %s1966_s11, %s2711_s8 }
  0x7c   : > { %p1969_p13 = pnand %p1967_p3, %p2766_p11 }
  0x7e   : > { %p1970_p10 = pneg %p1969_p13 }
  0x80   : > { %p1975_p8 = pnand %p1973_p6, %p1970_p10 }
  0x82   : > { %1978 = shalt.err (!%p1975_p8)
}
  0x83   : > { %s1979_s15 = scalar_lea.vmem %s374_s16, 16  ;;  %s1986_s1 = scalar_lea.vmem %s374_s16, 32 }
  0x84   : > { %p1980_p12 = scmp.ne.s32.totalorder %s374_s16, %s1979_s15  ;;  %p1987_p9 = scmp.lt.s32.totalorder %s374_s16, %s374_s16 }
  0x85   : > { %p1988_p2 = scmp.lt.s32.totalorder %s1986_s1, %s1979_s15 }
  0x86   : > { %p1982_p0 = pnand %p1980_p12, %p2766_p11 }
  0x87   : > { %p1989_p4 = por %p1988_p2, %p1987_p9 }
  0x88   : > { %p1983_p5 = pneg %p1982_p0 }
  0x8a   : > { %p1990_p7 = pnand %p1989_p4, %p1983_p5 }
  0x8c   : > { %1993 = shalt.err (!%p1990_p7)
}
  0x8d   : > { %1775 = dma.hbm_to_vmem [thread:$0]  (!%p2767_p1), %s2711_s8, 16, %s374_s16, [#allocation14]  }
  0x8e   : > { %s2431_s28 = scalar_lea.hbm %s2703_s0, %s2336_s26  ;;  %s394_s13 = scalar_lea.vmem [#allocation4], %s2333_s29 }
  0x8f   : > { %s402_s10 = sshll.u32 %s394_s13, 4  ;;  %s2770_s30 = sand.u32 1, %s2136_s19   ;;  %s403_s10 = int_to_ptr.vmem [resolvable:$true] %s402_s10 }
  0x90   : > { %s391_s22 = scalar_lea.sflag [#allocation5], %s2770_s30  ;;  %s1994_s12 = scalar_lea.hbm %s2431_s28, 128 }
  0x91   : > { %p1995_p7 = scmp.ne.s32.totalorder %s2431_s28, %s1994_s12  ;;  %p2771_p11 = scmp.ne.s32.totalorder %s2765_s3, 0 }
  0x92   : > { %s1999_s11 = scalar_lea.hbm %s2703_s0, 256  ;;  %p2000_p1 = scmp.lt.u32.totalorder %s2431_s28, %s2703_s0 }
  0x93   : > { %p1997_p3 = pnand %p1995_p7, %p2771_p11  ;;  %p2001_p10 = scmp.lt.u32.totalorder %s1999_s11, %s1994_s12 }
  0x94   : > { %p2003_p8 = scmp.lt.u32.totalorder %s1994_s12, %s2431_s28 }
  0x95   : > { %p1998_p13 = pneg %p1997_p3  ;;  %p2002_p6 = por %p2001_p10, %p2000_p1 }
  0x97   : > { %p2004_p12 = por %p2003_p8, %p2002_p6 }
  0x99   : > { %p2005_p0 = pnand %p2004_p12, %p1998_p13 }
  0x9b   : > { %2008 = shalt.err (!%p2005_p0)
}
  0x9c   : > { %s2009_s1 = scalar_lea.vmem %s403_s10, 128  ;;  %s2156_s9 = smov [#allocation4]  }
  0x9d   : > { %p2010_p5 = scmp.ne.s32.totalorder %s403_s10, %s2009_s1  ;;  %s2014_s21 = sshll.u32 %s2156_s9, 4  ;;  %s2015_s21 = int_to_ptr.vmem [resolvable:$false] %s2014_s21 }
  0x9e   : > { %s2016_s4 = scalar_lea.vmem %s2015_s21, 256  ;;  %p2017_p4 = scmp.lt.s32.totalorder %s403_s10, %s2015_s21 }
  0x9f   : > { %p2012_p9 = pnand %p2010_p5, %p2771_p11  ;;  %p2018_p7 = scmp.lt.s32.totalorder %s2016_s4, %s2009_s1 }
  0xa1   : > { %p2013_p2 = pneg %p2012_p9  ;;  %p2019_p3 = por %p2018_p7, %p2017_p4 }
  0xa3   : > { %p2020_p1 = pnand %p2019_p3, %p2013_p2 }
  0xa5   : > { %2023 = shalt.err (!%p2020_p1)
}
  0xa6   : > { %p2772_p10 = scmp.ne.s32.totalorder %s2763_s14, 0  ;;  %s2457_s30 = scalar_lea.hbm %s2705_s2, %s2336_s26 }
  0xa7   : > { %s431_s12 = scalar_lea.vmem [#allocation9], %s2333_s29  ;;  %s2024_s17 = scalar_lea.hbm %s2457_s30, 128 }
  0xa8   : > { %1779 = dma.hbm_to_vmem [thread:$0]  (!%p2772_p10), %s2431_s28, 128, %s403_s10, %s391_s22  }
  0xa9   : > { %s438_s16 = sshll.u32 %s431_s12, 4  ;;  %p2025_p13 = scmp.ne.s32.totalorder %s2457_s30, %s2024_s17  ;;  %s439_s16 = int_to_ptr.vmem [resolvable:$true] %s438_s16 }
  0xaa   : > { %s2029_s28 = scalar_lea.hbm %s2705_s2, 256  ;;  %p2030_p12 = scmp.lt.u32.totalorder %s2457_s30, %s2705_s2 }
  0xab   : > { %p2027_p6 = pnand %p2025_p13, %p2771_p11  ;;  %p2031_p0 = scmp.lt.u32.totalorder %s2029_s28, %s2024_s17 }
  0xac   : > { %p2033_p9 = scmp.lt.u32.totalorder %s2024_s17, %s2457_s30 }
  0xad   : > { %p2028_p8 = pneg %p2027_p6  ;;  %p2032_p5 = por %p2031_p0, %p2030_p12 }
  0xaf   : > { %p2034_p2 = por %p2033_p9, %p2032_p5 }
  0xb1   : > { %p2035_p4 = pnand %p2034_p2, %p2028_p8 }
  0xb3   : > { %2038 = shalt.err (!%p2035_p4)
}
  0xb4   : > { %s2039_s29 = scalar_lea.vmem %s439_s16, 128  ;;  %s2157_s26 = smov [#allocation9]  }
  0xb5   : > { %p2040_p7 = scmp.ne.s32.totalorder %s439_s16, %s2039_s29  ;;  %s2044_s15 = sshll.u32 %s2157_s26, 4  ;;  %s2045_s15 = int_to_ptr.vmem [resolvable:$false] %s2044_s15 }
  0xb6   : > { %s2046_s1 = scalar_lea.vmem %s2045_s15, 256  ;;  %p2047_p13 = scmp.lt.s32.totalorder %s439_s16, %s2045_s15 }
  0xb7   : > { %p2042_p3 = pnand %p2040_p7, %p2771_p11  ;;  %p2048_p6 = scmp.lt.s32.totalorder %s2046_s1, %s2039_s29 }
  0xb9   : > { %p2043_p1 = pneg %p2042_p3  ;;  %p2049_p10 = por %p2048_p6, %p2047_p13 }
  0xbb   : > { %p2050_p0 = pnand %p2049_p10, %p2043_p1 }
  0xbd   : > { %2053 = shalt.err (!%p2050_p0)
}
  0xbe   : > { %p2773_p12 = scmp.ne.s32.totalorder %s2763_s14, 0  ;;  %p2774_p8 = scmp.ne.s32.totalorder %s2754_s27, 0 }
  0xbf   : > { %s2481_s3 = sand.u32 (!%p2774_p8), 1, %s2132_s18   ;;  %p2775_p11 = scmp.ne.s32.totalorder (!%p2774_p8), %s2751_s25, 0 }
  0xc0   : > { %1785 = dma.hbm_to_vmem [thread:$0]  (!%p2773_p12), %s2457_s30, 128, %s439_s16, %s2357_s24  }
  0xc1   : > { %447 = sbr.rel (%p2774_p8) target bundleno = 2828 (0xb0c), region = 64  ;;  %s2484_s9 = sshll.u32 (!%p2774_p8), %s2481_s3, 3 }
  0xc2   : > { %s450_s21 = scalar_lea.sflag (!%p2774_p8), [#allocation5], %s2481_s3  ;;  %s453_s4 = scalar_lea.vmem (!%p2774_p8), [#allocation4], %s2484_s9 }
  0xc8   : > { %2107 = dma.done.wait (%p2775_p11), %s450_s21, 128  }
  0xc9   : > { %2109 = vsyncadd (%p2775_p11), %s450_s21, 4294967168  ;;  %s458_s27 = sand.u32 1, %s2255_s23   ;;  %s462_s24 = scalar_lea.vmem [#allocation7], %s2484_s9 }
  0xca   : > { %s459_s14 = scalar_lea.sflag [#allocation8], %s458_s27 }
  0xcb   : > { %2111 = dma.done.wait (%p2775_p11), %s459_s14, 256  }
  0xcc   : > { %2113 = vsyncadd (%p2775_p11), %s459_s14, 4294967040  ;;  %s471_s6 = scalar_lea.vmem [#allocation9], %s2484_s9  ;;  %p2776_p10 = scmp.eq.s32.totalorder %s2255_s23, 0 }
  0xce   : > { %2115 = dma.done.wait (%p2776_p10), [#allocation11], 512   ;;  %p2777_p5 = pmov %p2776_p10 }
  0xd0   : > { %2117 = vsyncadd (%p2777_p5), [#allocation11], 4294966784  ;;  %p2778_p9 = pmov %p2777_p5 }
  0xd1   : > { %p2779_p2 = pmov %p2777_p5 }
  0xd2   : > { %2119 = dma.done.wait (%p2778_p9), [#allocation14], 16  }
  0xd3   : > { %2121 = vsyncadd (%p2779_p2), [#allocation14], 4294967280  ;;  %v2158_v0 = vmov 0.0   ;;  %vm2159_vm0 = vmmov 0   ;;  %v1856_v1 = vld [vmem:[%s2708_s5] sm:$0xff]   ;;  %v1857_v2 = vld [vmem:[%s2708_s5 + $0x8] sm:$0xff]  }
  0xd4   : > { %1650 = vmatprep.subr.bf16.mxu0 %v2158_v0  ;;  %1654 = vmatprep.mubr.msk.bf16.mxu0 %vm2159_vm0, %v2158_v0  ;;  %v537_v3 = vld [vmem:[%s462_s24] sm:$0xff]  ;;  %vm564_vm1 = vcmask 261120   ;;  %v679_v7 = vld [vmem:[%s453_s4] sm:$0xff]  ;;  %s2780_s17 = sld [smem:[#allocation32_spill]]  ;;  %vm675_vm2 = vcmask 257024   ;;  %s2781_s28 = sld [smem:[#allocation31_spill]] }
  0xd5   : > { %1658 = vmatprep.subr.bf16.mxu1 %v2158_v0  ;;  %1662 = vmatprep.mubr.msk.bf16.mxu1 %vm2159_vm0, %v2158_v0  ;;  %v538_v4 = vpack.c.bf16 %v537_v3, %v537_v3  ;;  %v1858_v5 = vld [vmem:[#allocation10] sm:$0xff]   ;;  %v1859_v6 = vld [vmem:[#allocation10 + $0x8] sm:$0xff]   ;;  %v680_v8 = vpack.c.bf16 %v679_v7, %v679_v7  ;;  %v1860_v9 = vld [vmem:[#allocation12] sm:$0xff]   ;;  %vm756_vm3 = vcmask 64512   ;;  %s2160_s10 = smov 120   ;;  %vm818_vm4 = vcmask 1043456  }
  0xd6   : > { %1651 = vmatpush3.bf16.msra.mxu0 %v1856_v1  ;;  %1659 = vmatpush3.bf16.msra.mxu1 %v1860_v9  ;;  %v1861_v10 = vld [vmem:[#allocation12 + $0x8] sm:$0xff]   ;;  %v1590_v31 = vld [vmem:[#allocation13] ss:$0 sm:$0xff]  ;;  %s2161_s22 = smov 112   ;;  %s2782_s15 = sld [smem:[#allocation33_spill]] }
  0xd7   : > { %1652 = vmatprep.subr.bf16.mxu0 %v2158_v0  ;;  %1660 = vmatprep.subr.bf16.mxu1 %v2158_v0  ;;  %v539_v11 = vld [vmem:[%s471_s6] sm:$0xff]  ;;  %s2162_s4 = smov 104   ;;  %s2783_s25 = sld [smem:[#allocation22_spill]] }
  0xd8   : > { %v540_v12 = vpack.c.bf16 %v539_v11, %v539_v11  ;;  %s2784_s23 = sld [smem:[#allocation34_spill]]  ;;  %s2785_s12 = sld [smem:[#allocation27_spill]] }
  0xd9   : > { %s1399_s29 = scalar_lea.sflag [#allocation6], %s2481_s3  ;;  %s2163_s26 = smov [#allocation15]  }
  0xda   : > { %1653 = vmatpush3.bf16.msra.mxu0 %v1857_v2  ;;  %1661 = vmatpush3.bf16.msra.mxu1 %v1861_v10  ;;  %v1586_v13 = vld [vmem:[%s2780_s17] ss:$0 sm:$0xff]  ;;  %s531_s17 = scalar_lea.vmem [#allocation15], %s2484_s9  ;;  %s2058_s1 = sshll.u32 %s2163_s26, 4  ;;  %s2059_s1 = int_to_ptr.vmem [resolvable:$false] %s2058_s1 }
  0xdb   : > { %1666 = vmatprep.subr.bf16.mxu0 %v2158_v0  ;;  %1674 = vmatprep.subr.bf16.mxu1 %v2158_v0  ;;  %v1594_v20 = vld [vmem:[%s2781_s28] ss:$0 sm:$0xff]  ;;  %s1413_s11 = sshll.u32 %s531_s17, 4  ;;  %s2060_s21 = scalar_lea.vmem %s2059_s1, 256  ;;  %s2655_s11 = int_to_ptr.vmem [resolvable:$true] %s1413_s11 }
  0xdc   : > { %v752_v11 = vld [vmem:[%s2782_s15] sm:$0xf]  ;;  %s2054_s9 = scalar_lea.vmem %s2655_s11, 128  ;;  %p2061_p13 = scmp.lt.s32.totalorder %s2655_s11, %s2059_s1 }
  0xdd   : > { %1655 = vmatmul.mubr.msk.bf16.vlgmr.msra.gmra.mrb[0].mxu0 %vm564_vm1, %v538_v4  ;;  %1663 = vmatmul.mubr.msk.bf16.vlgmr.msra.gmra.mrb[0].mxu1 %vm564_vm1, %v540_v12  ;;  %s1614_s16 = sshll.u32 %s2783_s25, 7  ;;  %p2055_p4 = scmp.ne.s32.totalorder %s2655_s11, %s2054_s9 }
  0xde   : > { %1667 = vmatpush3.bf16.msra.mxu0 %v1858_v5  ;;  %1670 = vmatprep.mubr.msk.bf16.mxu0 %vm2159_vm0, %v2158_v0  ;;  %v753_v5 = vld [vmem:[%s2782_s15 + $0x4] sm:$0xf]  ;;  %p2787_p7 = scmp.ne.s32.totalorder %s2785_s12, 0  ;;  %p2062_p6 = scmp.lt.s32.totalorder %s2060_s21, %s2054_s9 }
  0xdf   : > { %1668 = vmatprep.subr.bf16.mxu0 %v2158_v0  ;;  %1676 = vmatprep.mubr.msk.bf16.mxu1 %vm2159_vm0, %v2158_v0 }
  0xe0   : > { %p2056_p3 = pnand %p2055_p4, %p2787_p7  ;;  %p2063_p0 = por %p2062_p6, %p2061_p13 }
  0xe2   : > { %1669 = vmatpush3.bf16.msra.mxu0 %v1859_v6  ;;  %v985_v6 = vsel %vm818_vm4, %v753_v5, 0  ;;  %p2057_p1 = pneg %p2056_p3 }
  0xe3   : > { %1680 = vmatprep.subr.bf16.mxu0 %v2158_v0 }
  0xe4   : > { %p2064_p12 = pnand %p2063_p0, %p2057_p1 }
  0xe5   : > { %1671 = vmatmul.mubr.msk.bf16.vlgmr.msra.gmra.mrb[4].mxu0 %vm564_vm1, %v680_v8 }
  0xe6   : > { %1682 = vmatprep.mubr.msk.bf16.mxu0 %vm2159_vm0, %v2158_v0 }
 0x1b0   : > { %v602_v14 = vpop.f32.mrb[0].mxu0  ;;  %v668_v32 = vpop.f32.mrb[0].mxu1 }
 0x1b1   : > { %v603_v15 = vadd.f32 %v1586_v13, %v602_v14  ;;  %v1656_v16 = vpop.f32.mrb[1].mxu0  ;;  %v669_v33 = vadd.f32 %v1590_v31, %v668_v32  ;;  %v1664_v34 = vpop.f32.mrb[1].mxu1  ;;  %v1031_v14 = vsel %vm818_vm4, %v752_v11, 0 }
 0x1b2   : > { %v605_v17 = vpop.f32.mrb[2].mxu0  ;;  %v671_v35 = vpop.f32.mrb[2].mxu1 }
 0x1b3   : > { %v674_v18 = vpack.c.bf16 %v603_v15, %v603_v15  ;;  %v1657_v19 = vpop.f32.mrb[3].mxu0  ;;  %v677_v36 = vpack.c.bf16 %v669_v33, %v669_v33  ;;  %v1665_v37 = vpop.f32.mrb[3].mxu1 }
 0x1b5   : > { %676 = vst.msk [vmem:[#allocation2] sm:$0xf] %vm675_vm2, %v674_v18  ;;  %678 = vst.msk [vmem:[#allocation3] sm:$0xf] %vm675_vm2, %v677_v36 }
 0x1b8   : > { %v742_v21 = vpop.f32.mrb[4].mxu0 }
 0x1b9   : > { %v743_v22 = vadd.f32 %v1594_v20, %v742_v21  ;;  %v1672_v23 = vpop.f32.mrb[5].mxu0 }
 0x1ba   : > { %v745_v24 = vpop.f32.mrb[6].mxu0 }
 0x1bb   : > { %v1673_v25 = vpop.f32.mrb[7].mxu0  ;;  %v748_v27 = vmul.f32 0.35355338, %v743_v22 }
 0x1bc   : > { %v750_v26 = vld [vmem:[#allocation2] sm:$0xf]  ;;  %v751_v38 = vld [vmem:[#allocation3] sm:$0xf] }
 0x1bd   : > { %v761_v28 = vsel %vm756_vm3, %v750_v26, 0  ;;  %v2546_v29 = vcombine.low %v750_v26, %v750_v26  ;;  %v2551_v30 = vpack.c.bf16 %v748_v27, %v748_v27  ;;  %v820_v39 = vsel %vm818_vm4, %v751_v38, 0 }
 0x1be   : > { %1675 = vmatpush3.bf16.xpose.msra.mxu1 %v761_v28  ;;  %1681 = vmatpush3.bf16.msra.mxu0 %v820_v39  ;;  %v2570_v58 = vcombine.low %v751_v38, %v751_v38 }
 0x1bf   : > { %869 = vrot.lane.b32.xlu0 %v2546_v29, %s2160_s10  ;;  %1686 = vmatprep.subr.bf16.mxu1 %v2158_v0 }
 0x1c0   : > { %1692 = vmatprep.subr.bf16.mxu0 %v2158_v0 }
 0x1c3   : > { %864 = vrot.lane.b32.xlu0 %v2551_v30, %s2160_s10 }
 0x1c5   : > { %1677 = vmatmul.mubr.msk.bf16.vlgmr.msra.gmra.mrb[4].mxu1 %vm756_vm3, %v2551_v30 }
 0x1c6   : > { %1688 = vmatprep.mubr.msk.bf16.mxu1 %vm2159_vm0, %v2158_v0 }
 0x231   : > { %v870_v40 = vpop.permute.xlu0 %869 }
 0x232   : > { %v875_v41 = vsel %vm756_vm3, %v870_v40, 0 }
 0x233   : > { %1687 = vmatpush3.bf16.xpose.msra.mxu1 %v875_v41 }
 0x234   : > { %1698 = vmatprep.subr.bf16.mxu1 %v2158_v0 }
 0x235   : > { %v865_v42 = vpop.permute.xlu0 %864 }
 0x23a   : > { %1689 = vmatmul.mubr.msk.bf16.vlgmr.msra.gmra.mrb[8].mxu1 %vm756_vm3, %v865_v42 }
 0x23b   : > { %1700 = vmatprep.mubr.msk.bf16.mxu1 %vm2159_vm0, %v2158_v0  ;;  %1699 = vmatpush3.bf16.msra.mxu1 %v985_v6 }
 0x23c   : > { %1710 = vmatprep.subr.bf16.mxu1 %v2158_v0 }
 0x298   : > { %v797_v43 = vpop.f32.mrb[4].mxu1 }
 0x299   : > { %v1678_v44 = vpop.f32.mrb[5].mxu1  ;;  %v803_v45 = vsel %vm756_vm3, %v797_v43, -inf }
 0x29a   : > { %804 = vmax.xlane.f32.xlu1 %v803_v45  ;;  %v800_v46 = vpop.f32.mrb[6].mxu1 }
 0x29b   : > { %v1679_v47 = vpop.f32.mrb[7].mxu1 }
 0x30d   : > { %v911_v48 = vpop.f32.mrb[8].mxu1 }
 0x30e   : > { %v1690_v49 = vpop.f32.mrb[9].mxu1  ;;  %v917_v50 = vsel %vm756_vm3, %v911_v48, -inf }
 0x30f   : > { %918 = vmax.xlane.f32.xlu1 %v917_v50  ;;  %v914_v51 = vpop.f32.mrb[10].mxu1 }
 0x310   : > { %v1691_v52 = vpop.f32.mrb[11].mxu1 }
 0x327   : > { %v805_v53 = vpop.xlane.xlu1 %804 }
 0x328   : > { %v806_v54 = vsub.f32 %v797_v43, %v805_v53 }
 0x32a   : > { %v807_v55 = vmul.f32 1.442695, %v806_v54 }
 0x32c   : > { %1864 = vpow2.f32 %v807_v55 }
 0x336   : > { %v1865_v56 = vpop.eup %1864 }
 0x337   : > { %v809_v57 = vsel %vm756_vm3, %v1865_v56, 0.0 }
 0x338   : > { %810 = vadd.xlane.f32.xlu0 %v809_v57 }
 0x34e   : > { %1135 = vrot.lane.b32.xlu0 %v2570_v58, %s2161_s22 }
 0x39c   : > { %v919_v59 = vpop.xlane.xlu1 %918 }
 0x39d   : > { %v920_v60 = vsub.f32 %v911_v48, %v919_v59 }
 0x39f   : > { %v921_v61 = vmul.f32 1.442695, %v920_v60 }
 0x3a1   : > { %1866 = vpow2.f32 %v921_v61 }
 0x3ab   : > { %v1867_v62 = vpop.eup %1866 }
 0x3ac   : > { %v923_v63 = vsel %vm756_vm3, %v1867_v62, 0.0 }
 0x3ad   : > { %924 = vadd.xlane.f32.xlu1 %v923_v63 }
 0x3be   : > { %932 = vrot.lane.b32.xlu1 %v2570_v58, %s2160_s10  ;;  %s2786_s10 = sld [smem:[#allocation35_spill]] }
 0x3c2   : > { %1075 = vrot.lane.b32.xlu1 %v2546_v29, %s2161_s22 }
 0x3c5   : > { %v811_v1 = vpop.xlane.xlu0 %810 }
 0x3c6   : > { %1868 = vrcp.f32 %v811_v1  ;;  %1073 = vrot.lane.b32.xlu1 %v2551_v30, %s2161_s22  ;;  %s2653_s22 = scalar_lea.hbm %s2786_s10, %s1614_s16 }
 0x3c9   : > { %v1136_v15 = vpop.permute.xlu0 %1135 }
 0x3ca   : > { %v1141_v20 = vsel %vm818_vm4, %v1136_v15, 0 }
 0x3d0   : > { %v1869_v2 = vpop.eup %1868 }
 0x3d1   : > { %v813_v3 = vmul.f32 %v1869_v2, %v1865_v56 }
 0x3d3   : > { %v814_v4 = vpack.c.bf16 %v813_v3, %v813_v3 }
 0x3d5   : > { %1683 = vmatmul.mubr.msk.bf16.vlgmr.msra.gmra.mrb[8].mxu0 %vm756_vm3, %v814_v4 }
 0x3d6   : > { %1694 = vmatprep.mubr.msk.bf16.mxu0 %vm2159_vm0, %v2158_v0 }
 0x43a   : > { %v925_v7 = vpop.xlane.xlu1 %924 }
 0x43b   : > { %1870 = vrcp.f32 %v925_v7 }
 0x43e   : > { %v933_v8 = vpop.permute.xlu1 %932 }
 0x43f   : > { %v938_v9 = vsel %vm818_vm4, %v933_v8, 0 }
 0x440   : > { %1693 = vmatpush3.bf16.msra.mxu0 %v938_v9 }
 0x441   : > { %1704 = vmatprep.subr.bf16.mxu0 %v2158_v0 }
 0x442   : > { %v1076_v22 = vpop.permute.xlu1 %1075 }
 0x443   : > { %v1081_v27 = vsel %vm756_vm3, %v1076_v22, 0 }
 0x445   : > { %v1871_v10 = vpop.eup %1870 }
 0x446   : > { %v927_v12 = vmul.f32 %v1871_v10, %v1867_v62  ;;  %v1074_v31 = vpop.permute.xlu1 %1073 }
 0x448   : > { %v928_v13 = vpack.c.bf16 %v927_v12, %v927_v12 }
 0x44a   : > { %1695 = vmatmul.mubr.msk.bf16.vlgmr.msra.gmra.mrb[12].mxu0 %vm756_vm3, %v928_v13 }
 0x44b   : > { %1705 = vmatpush3.bf16.msra.mxu0 %v1031_v14  ;;  %1706 = vmatprep.mubr.msk.bf16.mxu0 %vm2159_vm0, %v2158_v0 }
 0x44c   : > { %1716 = vmatprep.subr.bf16.mxu0 %v2158_v0 }
 0x4a8   : > { %v856_v16 = vpop.f32.mrb[8].mxu0 }
 0x4a9   : > { %v862_v17 = vpack.c.bf16 %v856_v16, %v856_v16  ;;  %v1684_v18 = vpop.f32.mrb[9].mxu0 }
 0x4aa   : > { %v859_v19 = vpop.f32.mrb[10].mxu0 }
 0x4ab   : > { %v1685_v21 = vpop.f32.mrb[11].mxu0  ;;  %1707 = vmatmul.mubr.msk.bf16.vlgmr.msra.gmra.mrb[16].mxu0 %vm756_vm3, %v862_v17 }
 0x4ac   : > { %1717 = vmatpush3.bf16.msra.mxu0 %v1141_v20  ;;  %1718 = vmatprep.mubr.msk.bf16.mxu0 %vm2159_vm0, %v2158_v0 }
 0x4ad   : > { %1728 = vmatprep.subr.bf16.mxu0 %v2158_v0 }
 0x51d   : > { %v974_v23 = vpop.f32.mrb[12].mxu0 }
 0x51e   : > { %v980_v24 = vpack.c.bf16 %v974_v23, %v974_v23  ;;  %v1696_v25 = vpop.f32.mrb[13].mxu0 }
 0x51f   : > { %v977_v26 = vpop.f32.mrb[14].mxu0 }
 0x520   : > { %v1697_v28 = vpop.f32.mrb[15].mxu0  ;;  %1701 = vmatmul.mubr.msk.bf16.vlgmr.msra.gmra.mrb[12].mxu1 %vm756_vm3, %v980_v24 }
 0x521   : > { %1711 = vmatpush3.bf16.xpose.msra.mxu1 %v1081_v27  ;;  %1712 = vmatprep.mubr.msk.bf16.mxu1 %vm2159_vm0, %v2158_v0  ;;  %v1612_v28 = vld [vmem:[%s2784_s23] ss:$0 sm:$0xff] }
 0x522   : > { %1722 = vmatprep.subr.bf16.mxu1 %v2158_v0 }
 0x528   : > { %1713 = vmatmul.mubr.msk.bf16.vlgmr.msra.gmra.mrb[16].mxu1 %vm756_vm3, %v1074_v31 }
 0x529   : > { %1724 = vmatprep.mubr.msk.bf16.mxu1 %vm2159_vm0, %v2158_v0 }
 0x57e   : > { %v1067_v32 = vpop.f32.mrb[16].mxu0 }
 0x57f   : > { %v1708_v33 = vpop.f32.mrb[17].mxu0 }
 0x580   : > { %v1070_v34 = vpop.f32.mrb[18].mxu0 }
 0x581   : > { %v1709_v35 = vpop.f32.mrb[19].mxu0 }
 0x5f3   : > { %v1021_v36 = vpop.f32.mrb[12].mxu1 }
 0x5f4   : > { %v2609_v37 = vadd.f32 %v1067_v32, %v1021_v36  ;;  %v1702_v38 = vpop.f32.mrb[13].mxu1 }
 0x5f5   : > { %v1024_v39 = vpop.f32.mrb[14].mxu1 }
 0x5f6   : > { %v1703_v40 = vpop.f32.mrb[15].mxu1 }
 0x5fb   : > { %v1117_v41 = vpop.f32.mrb[16].mxu1 }
 0x5fc   : > { %v1714_v42 = vpop.f32.mrb[17].mxu1  ;;  %v1123_v43 = vsel %vm756_vm3, %v1117_v41, -inf }
 0x5fd   : > { %1124 = vmax.xlane.f32.xlu1 %v1123_v43  ;;  %v1120_v44 = vpop.f32.mrb[18].mxu1 }
 0x5fe   : > { %v1715_v45 = vpop.f32.mrb[19].mxu1 }
 0x68a   : > { %v1125_v46 = vpop.xlane.xlu1 %1124 }
 0x68b   : > { %v1126_v47 = vsub.f32 %v1117_v41, %v1125_v46 }
 0x68d   : > { %v1127_v48 = vmul.f32 1.442695, %v1126_v47 }
 0x68f   : > { %1872 = vpow2.f32 %v1127_v48 }
 0x699   : > { %v1873_v49 = vpop.eup %1872 }
 0x69a   : > { %v1129_v50 = vsel %vm756_vm3, %v1873_v49, 0.0 }
 0x69b   : > { %1130 = vadd.xlane.f32.xlu0 %v1129_v50 }
 0x6b1   : > { %1233 = vrot.lane.b32.xlu0 %v2546_v29, %s2162_s4 }
 0x6b5   : > { %1231 = vrot.lane.b32.xlu0 %v2551_v30, %s2162_s4  ;;  %v754_v30 = vld [vmem:[%s2782_s15 + $0x8] sm:$0xf] }
 0x6b6   : > { %v1188_v57 = vsel %vm818_vm4, %v754_v30, 0 }
 0x6b7   : > { %1723 = vmatpush3.bf16.msra.mxu1 %v1188_v57 }
 0x6b8   : > { %1734 = vmatprep.subr.bf16.mxu1 %v2158_v0 }
 0x728   : > { %v1131_v51 = vpop.xlane.xlu0 %1130 }
 0x729   : > { %1874 = vrcp.f32 %v1131_v51 }
 0x72c   : > { %v1234_v54 = vpop.permute.xlu0 %1233 }
 0x72d   : > { %v1239_v56 = vsel %vm756_vm3, %v1234_v54, 0 }
 0x730   : > { %v1232_v29 = vpop.permute.xlu0 %1231 }
 0x733   : > { %v1875_v52 = vpop.eup %1874 }
 0x734   : > { %v1133_v53 = vmul.f32 %v1875_v52, %v1873_v49 }
 0x736   : > { %v1134_v55 = vpack.c.bf16 %v1133_v53, %v1133_v53 }
 0x738   : > { %1719 = vmatmul.mubr.msk.bf16.vlgmr.msra.gmra.mrb[20].mxu0 %vm756_vm3, %v1134_v55 }
 0x739   : > { %1729 = vmatpush3.bf16.xpose.msra.mxu0 %v1239_v56  ;;  %1730 = vmatprep.mubr.msk.bf16.mxu0 %vm2159_vm0, %v2158_v0 }
 0x73a   : > { %1740 = vmatprep.subr.bf16.mxu0 %v2158_v0 }
 0x740   : > { %1731 = vmatmul.mubr.msk.bf16.vlgmr.msra.gmra.mrb[24].mxu0 %vm756_vm3, %v1232_v29 }
 0x741   : > { %1742 = vmatprep.mubr.msk.bf16.mxu0 %vm2159_vm0, %v2158_v0 }
 0x80b   : > { %v1177_v59 = vpop.f32.mrb[20].mxu0 }
 0x80c   : > { %v1183_v60 = vpack.c.bf16 %v1177_v59, %v1177_v59  ;;  %v1720_v61 = vpop.f32.mrb[21].mxu0 }
 0x80d   : > { %v1180_v62 = vpop.f32.mrb[22].mxu0 }
 0x80e   : > { %v1721_v63 = vpop.f32.mrb[23].mxu0  ;;  %1725 = vmatmul.mubr.msk.bf16.vlgmr.msra.gmra.mrb[20].mxu1 %vm756_vm3, %v1183_v60 }
 0x80f   : > { %1736 = vmatprep.mubr.msk.bf16.mxu1 %vm2159_vm0, %v2158_v0  ;;  %v755_v0 = vld [vmem:[%s2782_s15 + $0xc] sm:$0xf] }
 0x810   : > { %v1346_v11 = vsel %vm818_vm4, %v755_v0, 0 }
 0x811   : > { %1741 = vmatpush3.bf16.msra.mxu0 %v1346_v11 }
 0x813   : > { %v1275_v1 = vpop.f32.mrb[24].mxu0 }
 0x814   : > { %v1732_v2 = vpop.f32.mrb[25].mxu0  ;;  %v1281_v3 = vsel %vm756_vm3, %v1275_v1, -inf }
 0x815   : > { %1282 = vmax.xlane.f32.xlu0 %v1281_v3  ;;  %v1278_v4 = vpop.f32.mrb[26].mxu0 }
 0x816   : > { %v1733_v5 = vpop.f32.mrb[27].mxu0 }
 0x8a2   : > { %v1283_v6 = vpop.xlane.xlu0 %1282 }
 0x8a3   : > { %v1284_v7 = vsub.f32 %v1275_v1, %v1283_v6 }
 0x8a5   : > { %v1285_v8 = vmul.f32 1.442695, %v1284_v7 }
 0x8a7   : > { %1876 = vpow2.f32 %v1285_v8 }
 0x8b1   : > { %v1877_v9 = vpop.eup %1876 }
 0x8b2   : > { %v1287_v10 = vsel %vm756_vm3, %v1877_v9, 0.0 }
 0x8b3   : > { %1288 = vadd.xlane.f32.xlu1 %v1287_v10 }
 0x8c4   : > { %1293 = vrot.lane.b32.xlu1 %v2570_v58, %s2162_s4 }
 0x8e1   : > { %v1224_v12 = vpop.f32.mrb[20].mxu1 }
 0x8e2   : > { %v1230_v13 = vadd.f32 %v1224_v12, %v2609_v37  ;;  %v1726_v14 = vpop.f32.mrb[21].mxu1 }
 0x8e3   : > { %v1227_v15 = vpop.f32.mrb[22].mxu1 }
 0x8e4   : > { %v1727_v16 = vpop.f32.mrb[23].mxu1 }
 0x940   : > { %v1289_v17 = vpop.xlane.xlu1 %1288 }
 0x941   : > { %1878 = vrcp.f32 %v1289_v17 }
 0x944   : > { %v1294_v18 = vpop.permute.xlu1 %1293 }
 0x945   : > { %v1299_v58 = vsel %vm818_vm4, %v1294_v18, 0 }
 0x946   : > { %1735 = vmatpush3.bf16.msra.mxu1 %v1299_v58 }
 0x94b   : > { %v1879_v19 = vpop.eup %1878 }
 0x94c   : > { %v1291_v20 = vmul.f32 %v1879_v19, %v1877_v9 }
 0x94e   : > { %v1292_v21 = vpack.c.bf16 %v1291_v20, %v1291_v20 }
 0x950   : > { %1737 = vmatmul.mubr.msk.bf16.vlgmr.msra.gmra.mrb[24].mxu1 %vm756_vm3, %v1292_v21 }
 0xa23   : > { %v1335_v22 = vpop.f32.mrb[24].mxu1 }
 0xa24   : > { %v1341_v23 = vpack.c.bf16 %v1335_v22, %v1335_v22  ;;  %v1738_v24 = vpop.f32.mrb[25].mxu1 }
 0xa25   : > { %v1338_v25 = vpop.f32.mrb[26].mxu1 }
 0xa26   : > { %v1739_v26 = vpop.f32.mrb[27].mxu1  ;;  %1743 = vmatmul.mubr.msk.bf16.vlgmr.msra.gmra.mrb[28].mxu0 %vm756_vm3, %v1341_v23 }
 0xaf9   : > { %v1382_v27 = vpop.f32.mrb[28].mxu0 }
 0xafa   : > { %v1388_v31 = vadd.f32 %v1382_v27, %v1230_v13  ;;  %v1744_v32 = vpop.f32.mrb[29].mxu0 }
 0xafb   : > { %v1385_v33 = vpop.f32.mrb[30].mxu0 }
 0xafc   : > { %v1396_v34 = vadd.f32 %v1612_v28, %v1388_v31  ;;  %v1745_v35 = vpop.f32.mrb[31].mxu0 }
 0xafe   : > { %1397 = vst.msk [vmem:[%s531_s17] sm:$0xff] %vm564_vm1, %v1396_v34 }
 0xaff   : > { %2067 = shalt.err (!%p2064_p12)
}
 0xb00   : > { %s2068_s3 = scalar_lea.hbm %s2653_s22, 128  ;;  %s2072_s14 = scalar_lea.hbm %s2786_s10, 256 }
 0xb01   : > { %p2069_p8 = scmp.ne.s32.totalorder %s2653_s22, %s2068_s3  ;;  %p2073_p5 = scmp.lt.u32.totalorder %s2653_s22, %s2786_s10 }
 0xb02   : > { %p2074_p9 = scmp.lt.u32.totalorder %s2072_s14, %s2068_s3  ;;  %p2076_p4 = scmp.lt.u32.totalorder %s2068_s3, %s2653_s22 }
 0xb03   : > { %p2070_p11 = pnand %p2069_p8, %p2787_p7 }
 0xb04   : > { %p2075_p2 = por %p2074_p9, %p2073_p5 }
 0xb05   : > { %p2071_p10 = pneg %p2070_p11 }
 0xb06   : > { %p2077_p3 = por %p2076_p4, %p2075_p2 }
 0xb08   : > { %p2078_p1 = pnand %p2077_p3, %p2071_p10 }
 0xb0a   : > { %2081 = shalt.err (!%p2078_p1)
}
 0xb0b   : > { %1764 = dma.vmem_to_hbm [thread:$0]  (%p2787_p7), %s2655_s11, 128, %s2653_s22, %s1399_s29  }
 0xb0c PF: > { %s2788_s25 = sld [smem:[#allocation21_spill]]  ;;  %s2789_s13 = sld [smem:[#allocation25_spill]] }
 0xb0d   : > { %s2790_s30 = sld [smem:[#allocation24_spill]] }
 0xb12   : > { %s1425_s23 = sand.u32 1, %s2788_s25   ;;  %p2791_p13 = scmp.ne.s32.totalorder %s2789_s13, 0 }
 0xb13   : > { %p2792_p6 = scmp.ge.s32.totalorder %s2790_s30, 2  ;;  %s1426_s16 = scalar_lea.sflag [#allocation6], %s1425_s23 }
 0xb15   : > { %p1787_p0 = pnand %p2792_p6, %p2791_p13 }
 0xb17   : > { %2123 = dma.done.wait (!%p1787_p0), %s1426_s16, 128  }
 0xb18   : > { %2125 = vsyncadd (!%p1787_p0), %s1426_s16, 4294967168  ;;  %s32_s22 = sadd.s32 1, %s2790_s30   ;;  %s2793_s12 = sld [smem:[#allocation28_spill]] }
 0xb19   : > { %p29_p12 = scmp.ge.s32.totalorder %s32_s22, 4   ;;  %s2794_s20 = sld [smem:[#allocation23_spill]] }
 0xb1a   : > { %s2795_s21 = sld [smem:[#allocation26_spill]]  ;;  %s2796_s17 = smov %s2132_s18 }
 0xb1b   : > { %s2797_s18 = smov %s2136_s19  ;;  %31 = sbr.rel (!%p29_p12) target bundleno = 18 (0x12), region = 149 }
 0xb1e   : > { %s2798_s19 = smov %s2793_s12 }
 0xb22   :  { %1431 = vsyncpa [#allocation5], 1 }
 0xb23   :  { %1433 = vsyncpa [#allocation5 + $0x1], 1 }
 0xb24   :  { %1434 = vsyncpa [#allocation8], 1 }
 0xb25   :  { %1436 = vsyncpa [#allocation8 + $0x1], 1 }
 0xb26   :  { %1437 = vsyncpa [#allocation11], 1 }
 0xb27   :  { %1438 = vsyncpa [#allocation14], 1 }
 0xb28   :  { %1439 = vsyncpa [#allocation6], 1 }
 0xb29   :  { %1441 = vsyncpa [#allocation6 + $0x1], 1 }

</bundles_post_ra>
